<compile_context>
chip_gen: v6e
topology: v6e:2x2x1
jax: 0.10.0
libtpu: 0.0.40
codegen_flags: <defaults>
</compile_context>

<pallas_src>
import functools

import jax
import jax.numpy as jnp
from jax.experimental import pallas as pl
from jax.experimental.pallas import tpu as pltpu

IN_FEATURES = 28 * 28          # 784
HIDDEN = 512
LATENT = 2
HEAD_PAD = 128                 # lane-dense fused head width: [mu | logsig | zeros]


def _round_up(x, m):
    return ((x + m - 1) // m) * m


def encoder_kernel(x_ref, w1_ref, b1_ref, wh_ref, bh_ref, out_ref):
    # x arrives f32 (single HBM read); cast to bf16 right before the MXU.
    x = x_ref[...].astype(jnp.bfloat16)                             # (bm, 784)
    h = jnp.dot(x, w1_ref[...], preferred_element_type=jnp.float32) # MXU, f32 acc
    h = jnp.maximum(h + b1_ref[...], 0.0)                           # f32 bias + ReLU (VPU)
    out = jnp.dot(h.astype(jnp.bfloat16), wh_ref[...],
                  preferred_element_type=jnp.float32) + bh_ref[...]
    out_ref[...] = out                                              # (bm, 128) unmasked store


def prepare_params(w1, b1, wmu, bmu, wls, bls):
    """One-time weight preprocessing (call at init, NOT per forward):
    bf16 MXU operands + zero-padded lane-dense fused [mu|logsig] head."""
    w1_bf = jnp.asarray(w1, jnp.bfloat16)                           # (784, 512)
    b1f = jnp.asarray(b1, jnp.float32).reshape(1, HIDDEN)
    wh = jnp.zeros((HIDDEN, HEAD_PAD), jnp.float32)
    wh = wh.at[:, :LATENT].set(wmu)
    wh = wh.at[:, LATENT:2 * LATENT].set(wls)
    bh = jnp.zeros((1, HEAD_PAD), jnp.float32)
    bh = bh.at[:, :LATENT].set(bmu.reshape(1, LATENT))
    bh = bh.at[:, LATENT:2 * LATENT].set(bls.reshape(1, LATENT))
    return w1_bf, b1f, wh.astype(jnp.bfloat16), bh


@functools.partial(jax.jit, static_argnames=("block_b",))
def encoder_forward(x_nchw, w1_bf, b1f, wh_bf, bh, *, block_b=512):
    B = x_nchw.shape[0]
    x = x_nchw.reshape(B, -1).astype(jnp.float32)                   # (B, 784) f32
    assert x.shape[1] == IN_FEATURES

    # Single grid step whenever B fits one tile; megacore split only appears
    # naturally once B > block_b (where each step is big enough to pay off).
    bm = min(block_b, _round_up(B, 8))
    Bp = _round_up(B, bm)
    if Bp != B:
        x = jnp.pad(x, ((0, Bp - B), (0, 0)))

    grid = (Bp // bm,)
    full = lambda i: (0, 0)          # weights: VMEM-resident across the grid
    tile = lambda i: (i, 0)          # batch tile

    flops = 2 * Bp * IN_FEATURES * HIDDEN + 2 * Bp * HIDDEN * HEAD_PAD
    bytes_accessed = (Bp * IN_FEATURES * 4            # x (f32 in)
                      + IN_FEATURES * HIDDEN * 2      # W1 bf16
                      + HIDDEN * 4                    # b1
                      + HIDDEN * HEAD_PAD * 2         # fused head W
                      + HEAD_PAD * 4                  # fused head b
                      + Bp * HEAD_PAD * 4)            # out

    out = pl.pallas_call(
        encoder_kernel,
        out_shape=jax.ShapeDtypeStruct((Bp, HEAD_PAD), jnp.float32),
        grid_spec=pltpu.PrefetchScalarGridSpec(
            num_scalar_prefetch=0,
            grid=grid,
            in_specs=[
                pl.BlockSpec((bm, IN_FEATURES), tile),        # x tile (f32)
                pl.BlockSpec((IN_FEATURES, HIDDEN), full),    # W1 (resident, bf16)
                pl.BlockSpec((1, HIDDEN), full),              # b1 (f32)
                pl.BlockSpec((HIDDEN, HEAD_PAD), full),       # fused head W (bf16)
                pl.BlockSpec((1, HEAD_PAD), full),            # fused head b (f32)
            ],
            out_specs=pl.BlockSpec((bm, HEAD_PAD), tile),     # [mu|logsig|0...]
        ),
        compiler_params=pltpu.CompilerParams(
            dimension_semantics=("parallel",)),
        cost_estimate=pl.CostEstimate(
            flops=flops, transcendentals=0, bytes_accessed=bytes_accessed),
        # Footprint at bm=512: x 2x1.6MB + W1 2x0.8MB + head/out ~1MB -> well
        # inside default scoped VMEM on v5e/v6e/v7x; no vmem_limit_bytes needed.
    )(x, w1_bf, b1f, wh_bf, bh)

    out = out[:B]
    return out[:, :LATENT], out[:, LATENT:2 * LATENT]


def init_params(key):
    # Deterministic init mimicking torch's Linear default (uniform +/- 1/sqrt(fan_in)).
    # Weights stored transposed vs torch (in_features, out_features): y = x @ W + b.
    k1, k2, k3, k4, k5, k6 = jax.random.split(key, 6)
    lim1 = 1.0 / jnp.sqrt(IN_FEATURES)
    lim2 = 1.0 / jnp.sqrt(HIDDEN)
    w1 = jax.random.uniform(k1, (IN_FEATURES, HIDDEN), jnp.float32, -lim1, lim1)
    b1 = jax.random.uniform(k2, (1, HIDDEN), jnp.float32, -lim1, lim1)
    wmu = jax.random.uniform(k3, (HIDDEN, LATENT), jnp.float32, -lim2, lim2)
    bmu = jax.random.uniform(k4, (1, LATENT), jnp.float32, -lim2, lim2)
    wls = jax.random.uniform(k5, (HIDDEN, LATENT), jnp.float32, -lim2, lim2)
    bls = jax.random.uniform(k6, (1, LATENT), jnp.float32, -lim2, lim2)
    return w1, b1, wmu, bmu, wls, bls


def reference_forward_f32(x_nchw, w1, b1, wmu, bmu, wls, bls):
    # Pure-f32 module semantics (matches the PyTorch spec numerics).
    x = x_nchw.reshape(x_nchw.shape[0], -1)
    h = jnp.maximum(x @ w1 + b1, 0.0)
    return h @ wmu + bmu, h @ wls + bls


def reference_forward_bf16(x_nchw, w1, b1, wmu, bmu, wls, bls):
    # Same precision policy as the kernel: bf16 MXU operands, f32 accumulate.
    x = x_nchw.reshape(x_nchw.shape[0], -1).astype(jnp.bfloat16)
    h = jnp.dot(x, w1.astype(jnp.bfloat16), preferred_element_type=jnp.float32)
    h = jnp.maximum(h + b1, 0.0)
    wh = jnp.concatenate([wmu, wls], axis=1).astype(jnp.bfloat16)
    bh = jnp.concatenate([bmu, bls], axis=1)
    out = jnp.dot(h.astype(jnp.bfloat16), wh,
                  preferred_element_type=jnp.float32) + bh
    return out[:, :LATENT], out[:, LATENT:]


if __name__ == "__main__":
    key = jax.random.PRNGKey(0)
    kx, kp = jax.random.split(key)

    B = 24   # small; exercises padding (24 -> 32) with a single grid step
    x = jax.random.normal(kx, (B, 1, 28, 28), jnp.float32)   # NCHW like torch
    raw_params = init_params(kp)
    fused_params = prepare_params(*raw_params)               # one-time prep

    mu, logsig = encoder_forward(x, *fused_params)
    jax.block_until_ready((mu, logsig))
    assert mu.shape == (B, LATENT) and logsig.shape == (B, LATENT)

    # Matched-precision reference (same bf16-in / f32-accumulate policy).
    mu_m, ls_m = reference_forward_bf16(x, *raw_params)
    assert jnp.allclose(mu, mu_m, atol=1e-4, rtol=1e-4)
    assert jnp.allclose(logsig, ls_m, atol=1e-4, rtol=1e-4)

    # Full-f32 module semantics; looser tolerance covers the bf16 MXU inputs.
    mu_f, ls_f = reference_forward_f32(x, *raw_params)
    assert jnp.allclose(mu, mu_f, atol=3e-2, rtol=3e-2)
    assert jnp.allclose(logsig, ls_f, atol=3e-2, rtol=3e-2)

    print("KERNEL_OK")
</pallas_src>

<mosaic_0001>
module attributes {stable_mosaic.version = 11 : i64} {
  func.func @encoder_kernel(%arg0: i32, %arg1: memref<24x784xf32, #tpu.memory_space<vmem>>, %arg2: memref<784x512xbf16, #tpu.memory_space<vmem>>, %arg3: memref<1x512xf32, #tpu.memory_space<vmem>>, %arg4: memref<512x128xbf16, #tpu.memory_space<vmem>>, %arg5: memref<1x128xf32, #tpu.memory_space<vmem>>, %arg6: memref<24x128xf32, #tpu.memory_space<vmem>>) attributes {dimension_semantics = [#tpu.dimension_semantics<parallel>], iteration_bounds = array<i64: 1>, scalar_prefetch = 0 : i64, scratch_operands = 0 : i64, tpu.core_type = #tpu.core_type<tc>, window_params = [{transform_indices = @transform_0, window_bounds = array<i64: 24, 784>}, {pipeline_mode = #tpu.pipeline_mode<synchronous>, transform_indices = @transform_1, window_bounds = array<i64: 784, 512>}, {pipeline_mode = #tpu.pipeline_mode<synchronous>, transform_indices = @transform_2, window_bounds = array<i64: 1, 512>}, {pipeline_mode = #tpu.pipeline_mode<synchronous>, transform_indices = @transform_3, window_bounds = array<i64: 512, 128>}, {pipeline_mode = #tpu.pipeline_mode<synchronous>, transform_indices = @transform_4, window_bounds = array<i64: 1, 128>}, {transform_indices = @transform_5, window_bounds = array<i64: 24, 128>}]} {
    %c0 = arith.constant 0 : index
    %c0_0 = arith.constant 0 : index
    %0 = vector.load %arg1[%c0, %c0_0] : memref<24x784xf32, #tpu.memory_space<vmem>>, vector<24x784xf32>
    %1 = arith.truncf %0 : vector<24x784xf32> to vector<24x784xbf16>
    %c0_1 = arith.constant 0 : index
    %c0_2 = arith.constant 0 : index
    %2 = vector.load %arg2[%c0_1, %c0_2] : memref<784x512xbf16, #tpu.memory_space<vmem>>, vector<784x512xbf16>
    %cst = arith.constant dense<0.000000e+00> : vector<24x512xf32>
    %3 = tpu.matmul %1, %2, %cst {dimension_numbers = #tpu.dot_dimension_numbers<[1], [0], [0], [1], [0, 0, 1, 1], [], []>} : vector<24x784xbf16>, vector<784x512xbf16>, vector<24x512xf32> -> vector<24x512xf32>
    %c0_3 = arith.constant 0 : index
    %c0_4 = arith.constant 0 : index
    %4 = vector.load %arg3[%c0_3, %c0_4] : memref<1x512xf32, #tpu.memory_space<vmem>>, vector<1x512xf32>
    %5 = vector.broadcast %4 : vector<1x512xf32> to vector<24x512xf32>
    %6 = arith.addf %3, %5 : vector<24x512xf32>
    %cst_5 = arith.constant 0.000000e+00 : f32
    %7 = vector.broadcast %cst_5 : f32 to vector<24x512xf32>
    %8 = arith.maximumf %6, %7 : vector<24x512xf32>
    %9 = arith.truncf %8 : vector<24x512xf32> to vector<24x512xbf16>
    %c0_6 = arith.constant 0 : index
    %c0_7 = arith.constant 0 : index
    %10 = vector.load %arg4[%c0_6, %c0_7] : memref<512x128xbf16, #tpu.memory_space<vmem>>, vector<512x128xbf16>
    %cst_8 = arith.constant dense<0.000000e+00> : vector<24x128xf32>
    %11 = tpu.matmul %9, %10, %cst_8 {dimension_numbers = #tpu.dot_dimension_numbers<[1], [0], [0], [1], [0, 0, 1, 1], [], []>} : vector<24x512xbf16>, vector<512x128xbf16>, vector<24x128xf32> -> vector<24x128xf32>
    %c0_9 = arith.constant 0 : index
    %c0_10 = arith.constant 0 : index
    %12 = vector.load %arg5[%c0_9, %c0_10] : memref<1x128xf32, #tpu.memory_space<vmem>>, vector<1x128xf32>
    %13 = vector.broadcast %12 : vector<1x128xf32> to vector<24x128xf32>
    %14 = arith.addf %11, %13 : vector<24x128xf32>
    %c0_11 = arith.constant 0 : index
    %c0_12 = arith.constant 0 : index
    %15 = vector.load %arg6[%c0_11, %c0_12] : memref<24x128xf32, #tpu.memory_space<vmem>>, vector<24x128xf32>
    tpu.vector_store %arg6[%c0_11, %c0_12], %14 {strides = array<i32>} : memref<24x128xf32, #tpu.memory_space<vmem>>, vector<24x128xf32>,
    return
  }
  func.func @transform_0(%arg0: i32) -> (i32, i32) {
    %c0_i32 = arith.constant 0 : i32
    %c0_i32_0 = arith.constant 0 : i32
    return %arg0, %c0_i32 : i32, i32
  }
  func.func @transform_1(%arg0: i32) -> (i32, i32) {
    %c0_i32 = arith.constant 0 : i32
    %c0_i32_0 = arith.constant 0 : i32
    %c0_i32_1 = arith.constant 0 : i32
    return %c0_i32, %c0_i32_0 : i32, i32
  }
  func.func @transform_2(%arg0: i32) -> (i32, i32) {
    %c0_i32 = arith.constant 0 : i32
    %c0_i32_0 = arith.constant 0 : i32
    %c0_i32_1 = arith.constant 0 : i32
    return %c0_i32, %c0_i32_0 : i32, i32
  }
  func.func @transform_3(%arg0: i32) -> (i32, i32) {
    %c0_i32 = arith.constant 0 : i32
    %c0_i32_0 = arith.constant 0 : i32
    %c0_i32_1 = arith.constant 0 : i32
    return %c0_i32, %c0_i32_0 : i32, i32
  }
  func.func @transform_4(%arg0: i32) -> (i32, i32) {
    %c0_i32 = arith.constant 0 : i32
    %c0_i32_0 = arith.constant 0 : i32
    %c0_i32_1 = arith.constant 0 : i32
    return %c0_i32, %c0_i32_0 : i32, i32
  }
  func.func @transform_5(%arg0: i32) -> (i32, i32) {
    %c0_i32 = arith.constant 0 : i32
    %c0_i32_0 = arith.constant 0 : i32
    return %arg0, %c0_i32 : i32, i32
  }
}

</mosaic_0001>

<bundles_post_ra>
// kernel: encoder_forward.1
= control target key start
LH: loop header
LB: loop body
LE: loop exit
PB: predicated region body
PF: predicated region fallthrough
CT: control target
= control target key end

     0   :  { %vm1254_vm0 = vcmask 130048   ;;  %s3545_s1 = inlined_call_operand.vmem [shape: bf16[784,512], index: 1, kind: input, shape index: {}]   ;;  %s3546_s0 = inlined_call_operand.vmem [shape: f32[24,784], index: 0, kind: input, shape index: {}]   ;;  %s3547_s3 = inlined_call_operand.vmem [shape: bf16[512,128], index: 3, kind: input, shape index: {}]   ;;  %s3548_s2 = inlined_call_operand.vmem [shape: f32[1,512], index: 2, kind: input, shape index: {}]   ;;  %s3549_s4 = inlined_call_operand.vmem [shape: f32[1,128], index: 4, kind: input, shape index: {}]   ;;  %s3550_s5 = inlined_call_operand.vmem [shape: f32[24,128], index: 5, kind: output, shape index: {}]  }
   0x1   :  { %v2345_v0 = vld [vmem:[%s3545_s1 + $0xe4] ss:$16 sps:$4 sm:$0xff]   ;;  %v2349_v2 = vld [vmem:[%s3545_s1 + $0xe0] ss:$16 sps:$4 sm:$0xff]   ;;  %v22_v46 = vld [vmem:[%s3546_s0 + $0x8] sm:$0xff] }
   0x2   :  { %v2347_v1 = vld [vmem:[%s3545_s1 + $0x2e4] ss:$16 sps:$4 sm:$0xff]   ;;  %1261 = vmatprep.subr.bf16.mxu0 %v2345_v0  ;;  %v2350_v3 = vld [vmem:[%s3545_s1 + $0x2e0] ss:$16 sps:$4 sm:$0xff]   ;;  %v24_v48 = vld [vmem:[%s3546_s0 + $0x18] sm:$0xff] }
   0x3   :  { %1312 = vmatprep.subr.bf16.mxu1 %v2347_v1  ;;  %v2351_v4 = vld [vmem:[%s3545_s1 + $0xc4] ss:$16 sps:$4 sm:$0xff]   ;;  %1262 = vmatpush1.bf16.msra.mxu0 %v2349_v2  ;;  %v2355_v6 = vld [vmem:[%s3545_s1 + $0xc0] ss:$16 sps:$4 sm:$0xff]  }
   0x4   :  { %1313 = vmatpush1.bf16.msra.mxu1 %v2350_v3  ;;  %v2353_v5 = vld [vmem:[%s3545_s1 + $0x2c4] ss:$16 sps:$4 sm:$0xff]   ;;  %1263 = vmatprep.subr.bf16.mxu0 %v2351_v4  ;;  %v2356_v7 = vld [vmem:[%s3545_s1 + $0x2c0] ss:$16 sps:$4 sm:$0xff]  }
   0x5   :  { %1314 = vmatprep.subr.bf16.mxu1 %v2353_v5  ;;  %v2357_v8 = vld [vmem:[%s3545_s1 + $0xa4] ss:$16 sps:$4 sm:$0xff]   ;;  %v2361_v10 = vld [vmem:[%s3545_s1 + $0xa0] ss:$16 sps:$4 sm:$0xff]  }
   0x6   :  { %v2359_v9 = vld [vmem:[%s3545_s1 + $0x2a4] ss:$16 sps:$4 sm:$0xff]   ;;  %v2362_v11 = vld [vmem:[%s3545_s1 + $0x2a0] ss:$16 sps:$4 sm:$0xff]  }
   0x7   :  { %1264 = vmatpush1.bf16.msra.mxu0 %v2355_v6  ;;  %v2363_v12 = vld [vmem:[%s3545_s1 + $0x84] ss:$16 sps:$4 sm:$0xff]   ;;  %v2367_v14 = vld [vmem:[%s3545_s1 + $0x80] ss:$16 sps:$4 sm:$0xff]  }
   0x8   :  { %1315 = vmatpush1.bf16.msra.mxu1 %v2356_v7  ;;  %1265 = vmatprep.subr.bf16.mxu0 %v2357_v8  ;;  %v2365_v13 = vld [vmem:[%s3545_s1 + $0x284] ss:$16 sps:$4 sm:$0xff]   ;;  %v2368_v15 = vld [vmem:[%s3545_s1 + $0x280] ss:$16 sps:$4 sm:$0xff]   ;;  %v28_v7 = vld [vmem:[%s3546_s0 + $0x38] sm:$0xff] }
   0x9   :  { %1316 = vmatprep.subr.bf16.mxu1 %v2359_v9  ;;  %v2369_v16 = vld [vmem:[%s3545_s1 + $0x64] ss:$16 sps:$4 sm:$0xff]   ;;  %v2373_v18 = vld [vmem:[%s3545_s1 + $0x60] ss:$16 sps:$4 sm:$0xff]   ;;  %v30_v9 = vld [vmem:[%s3546_s0 + $0x48] sm:$0xff] }
   0xa   :  { %v2371_v17 = vld [vmem:[%s3545_s1 + $0x264] ss:$16 sps:$4 sm:$0xff]   ;;  %v2374_v19 = vld [vmem:[%s3545_s1 + $0x260] ss:$16 sps:$4 sm:$0xff]  }
   0xb   :  { %1266 = vmatpush1.bf16.msra.mxu0 %v2361_v10  ;;  %v2375_v20 = vld [vmem:[%s3545_s1 + $0x44] ss:$16 sps:$4 sm:$0xff]   ;;  %v2379_v22 = vld [vmem:[%s3545_s1 + $0x40] ss:$16 sps:$4 sm:$0xff]  }
   0xc   :  { %1317 = vmatpush1.bf16.msra.mxu1 %v2362_v11  ;;  %1267 = vmatprep.subr.bf16.mxu0 %v2363_v12  ;;  %v2377_v21 = vld [vmem:[%s3545_s1 + $0x244] ss:$16 sps:$4 sm:$0xff]   ;;  %v2380_v23 = vld [vmem:[%s3545_s1 + $0x240] ss:$16 sps:$4 sm:$0xff]   ;;  %v36_v12 = vld [vmem:[%s3546_s0 + $0x78] sm:$0xff] }
   0xd   :  { %1318 = vmatprep.subr.bf16.mxu1 %v2365_v13  ;;  %v2381_v24 = vld [vmem:[%s3545_s1 + $0x24] ss:$16 sps:$4 sm:$0xff]   ;;  %v2385_v26 = vld [vmem:[%s3545_s1 + $0x20] ss:$16 sps:$4 sm:$0xff]  }
   0xe   :  { %v2383_v25 = vld [vmem:[%s3545_s1 + $0x224] ss:$16 sps:$4 sm:$0xff]   ;;  %v2386_v27 = vld [vmem:[%s3545_s1 + $0x220] ss:$16 sps:$4 sm:$0xff]  }
   0xf   :  { %1268 = vmatpush1.bf16.msra.mxu0 %v2367_v14  ;;  %v2387_v28 = vld [vmem:[%s3545_s1 + $0x4] ss:$16 sps:$4 sm:$0xff]   ;;  %v2391_v30 = vld [vmem:[%s3545_s1] ss:$16 sps:$4 sm:$0xff]  }
  0x10   :  { %1319 = vmatpush1.bf16.msra.mxu1 %v2368_v15  ;;  %1269 = vmatprep.subr.bf16.mxu0 %v2369_v16  ;;  %v2389_v29 = vld [vmem:[%s3545_s1 + $0x204] ss:$16 sps:$4 sm:$0xff]   ;;  %v2392_v31 = vld [vmem:[%s3545_s1 + $0x200] ss:$16 sps:$4 sm:$0xff]   ;;  %v38_v15 = vld [vmem:[%s3546_s0 + $0x88] sm:$0xff] }
  0x11   :  { %1320 = vmatprep.subr.bf16.mxu1 %v2371_v17  ;;  %v2393_v32 = vld [vmem:[%s3545_s1 + $0x1e4] ss:$16 sps:$4 sm:$0xff]   ;;  %v2397_v34 = vld [vmem:[%s3545_s1 + $0x1e0] ss:$16 sps:$4 sm:$0xff]  }
  0x12   :  { %v2395_v33 = vld [vmem:[%s3545_s1 + $0x3e4] ss:$16 sps:$4 sm:$0xff]   ;;  %v2398_v35 = vld [vmem:[%s3545_s1 + $0x3e0] ss:$16 sps:$4 sm:$0xff]  }
  0x13   :  { %1270 = vmatpush1.bf16.msra.mxu0 %v2373_v18  ;;  %v2399_v36 = vld [vmem:[%s3545_s1 + $0x1c4] ss:$16 sps:$4 sm:$0xff]   ;;  %v2403_v38 = vld [vmem:[%s3545_s1 + $0x1c0] ss:$16 sps:$4 sm:$0xff]  }
  0x14   :  { %1321 = vmatpush1.bf16.msra.mxu1 %v2374_v19  ;;  %1271 = vmatprep.subr.bf16.mxu0 %v2375_v20  ;;  %v2401_v37 = vld [vmem:[%s3545_s1 + $0x3c4] ss:$16 sps:$4 sm:$0xff]   ;;  %v2404_v39 = vld [vmem:[%s3545_s1 + $0x3c0] ss:$16 sps:$4 sm:$0xff]   ;;  %v2949_v19 = vpack.c.bf16 %v36_v12, %v36_v12  ;;  %v2951_v20 = vpack.c.bf16 %v38_v15, %v38_v15  ;;  %v2512_v12 = vld [vmem:[%s3545_s1 + $0x1cc] ss:$16 sps:$4 sm:$0xff]  }
  0x15   :  { %1322 = vmatprep.subr.bf16.mxu1 %v2377_v21  ;;  %v2405_v40 = vld [vmem:[%s3545_s1 + $0x1a4] ss:$16 sps:$4 sm:$0xff]   ;;  %v2409_v42 = vld [vmem:[%s3545_s1 + $0x1a0] ss:$16 sps:$4 sm:$0xff]   ;;  %v2458_v21 = vld [vmem:[%s3545_s1 + $0xec] ss:$16 sps:$4 sm:$0xff]  }
  0x16   :  { %v2407_v41 = vld [vmem:[%s3545_s1 + $0x3a4] ss:$16 sps:$4 sm:$0xff]   ;;  %v2410_v43 = vld [vmem:[%s3545_s1 + $0x3a0] ss:$16 sps:$4 sm:$0xff]  }
  0x17   :  { %1272 = vmatpush1.bf16.msra.mxu0 %v2379_v22  ;;  %v2411_v44 = vld [vmem:[%s3545_s1 + $0x184] ss:$16 sps:$4 sm:$0xff]   ;;  %v2415_v50 = vld [vmem:[%s3545_s1 + $0x180] ss:$16 sps:$4 sm:$0xff]  }
  0x18   :  { %1323 = vmatpush1.bf16.msra.mxu1 %v2380_v23  ;;  %1273 = vmatprep.subr.bf16.mxu0 %v2381_v24  ;;  %v2413_v45 = vld [vmem:[%s3545_s1 + $0x384] ss:$16 sps:$4 sm:$0xff]   ;;  %v2416_v51 = vld [vmem:[%s3545_s1 + $0x380] ss:$16 sps:$4 sm:$0xff]  }
  0x19   :  { %1324 = vmatprep.subr.bf16.mxu1 %v2383_v25  ;;  %v29_v47 = vld [vmem:[%s3546_s0 + $0x40] sm:$0xff]  ;;  %v31_v49 = vld [vmem:[%s3546_s0 + $0x50] sm:$0xff] }
  0x1a   :  { %v2417_v52 = vld [vmem:[%s3545_s1 + $0x164] ss:$16 sps:$4 sm:$0xff]   ;;  %v2861_v53 = vpack.c.bf16 %v29_v47, %v22_v46  ;;  %v2863_v54 = vpack.c.bf16 %v31_v49, %v24_v48  ;;  %v2421_v56 = vld [vmem:[%s3545_s1 + $0x160] ss:$16 sps:$4 sm:$0xff]   ;;  %v2468_v47 = vld [vmem:[%s3545_s1 + $0xa8] ss:$16 sps:$4 sm:$0xff]  }
  0x1b   :  { %1274 = vmatpush1.bf16.msra.mxu0 %v2385_v26  ;;  %v2419_v55 = vld [vmem:[%s3545_s1 + $0x364] ss:$16 sps:$4 sm:$0xff]   ;;  %v2422_v57 = vld [vmem:[%s3545_s1 + $0x360] ss:$16 sps:$4 sm:$0xff]   ;;  %v2476_v49 = vld [vmem:[%s3545_s1 + $0x8c] ss:$16 sps:$4 sm:$0xff]  }
  0x1c   :  { %1325 = vmatpush1.bf16.msra.mxu1 %v2386_v27  ;;  %1275 = vmatprep.subr.bf16.mxu0 %v2387_v28  ;;  %v2423_v58 = vld [vmem:[%s3545_s1 + $0x144] ss:$16 sps:$4 sm:$0xff]   ;;  %v2427_v60 = vld [vmem:[%s3545_s1 + $0x140] ss:$16 sps:$4 sm:$0xff]  }
  0x1d   :  { %1326 = vmatprep.subr.bf16.mxu1 %v2389_v29  ;;  %1293 = vmatprep.mubr.bf16.mxu0 %v2861_v53  ;;  %v2425_v59 = vld [vmem:[%s3545_s1 + $0x344] ss:$16 sps:$4 sm:$0xff]   ;;  %v2428_v61 = vld [vmem:[%s3545_s1 + $0x340] ss:$16 sps:$4 sm:$0xff]  }
  0x1e   :  { %1344 = vmatprep.mubr.bf16.mxu1 %v2863_v54  ;;  %v2429_v62 = vld [vmem:[%s3545_s1 + $0x124] ss:$16 sps:$4 sm:$0xff]   ;;  %v2433_v0 = vld [vmem:[%s3545_s1 + $0x120] ss:$16 sps:$4 sm:$0xff]  }
  0x1f   :  { %1276 = vmatpush1.bf16.msra.mxu0 %v2391_v30  ;;  %v2431_v63 = vld [vmem:[%s3545_s1 + $0x324] ss:$16 sps:$4 sm:$0xff]   ;;  %v2434_v1 = vld [vmem:[%s3545_s1 + $0x320] ss:$16 sps:$4 sm:$0xff]  }
  0x20   :  { %1327 = vmatpush1.bf16.msra.mxu1 %v2392_v31  ;;  %1277 = vmatprep.subr.bf16.mxu0 %v2393_v32  ;;  %v2435_v2 = vld [vmem:[%s3545_s1 + $0x104] ss:$16 sps:$4 sm:$0xff]   ;;  %v2439_v4 = vld [vmem:[%s3545_s1 + $0x100] ss:$16 sps:$4 sm:$0xff]   ;;  %v2671_v31 = vmov 0  }
  0x21   :  { %1328 = vmatprep.subr.bf16.mxu1 %v2395_v33  ;;  %v2437_v3 = vld [vmem:[%s3545_s1 + $0x304] ss:$16 sps:$4 sm:$0xff]   ;;  %v2440_v5 = vld [vmem:[%s3545_s1 + $0x300] ss:$16 sps:$4 sm:$0xff]   ;;  %v34_v33 = vld [vmem:[%s3546_s0 + $0x68] sm:$0xff] }
  0x22   :  { %v21_v6 = vld [vmem:[%s3546_s0] sm:$0xff]  ;;  %v23_v8 = vld [vmem:[%s3546_s0 + $0x10] sm:$0xff] }
  0x23   :  { %1278 = vmatpush2.bf16.msra.mxu0 %v2397_v34  ;;  %v2443_v10 = vld [vmem:[%s3545_s1 + $0x4e4] ss:$16 sps:$4 sm:$0xff]   ;;  %v2933_v13 = vpack.c.bf16 %v28_v7, %v21_v6  ;;  %v2935_v14 = vpack.c.bf16 %v30_v9, %v23_v8  ;;  %v2441_v16 = vld [vmem:[%s3545_s1 + $0x4e0] ss:$16 sps:$4 sm:$0xff]   ;;  %v2498_v6 = vld [vmem:[%s3545_s1 + $0x8] ss:$16 sps:$4 sm:$0xff]  }
  0x24   :  { %1329 = vmatpush2.bf16.msra.mxu1 %v2398_v35  ;;  %1279 = vmatprep.subr.bf16.mxu0 %v2399_v36  ;;  %v2446_v11 = vld [vmem:[%s3545_s1 + $0x604] ss:$16 sps:$4 sm:$0xff]   ;;  %v2444_v17 = vld [vmem:[%s3545_s1 + $0x600] ss:$16 sps:$4 sm:$0xff]   ;;  %v2456_v36 = vld [vmem:[%s3545_s1 + $0xe8] ss:$16 sps:$4 sm:$0xff]  }
  0x25   :  { %1330 = vmatprep.subr.bf16.mxu1 %v2401_v37  ;;  %v2449_v18 = vld [vmem:[%s3545_s1 + $0x4c4] ss:$16 sps:$4 sm:$0xff]   ;;  %v2447_v22 = vld [vmem:[%s3545_s1 + $0x4c0] ss:$16 sps:$4 sm:$0xff]   ;;  %v2506_v8 = vld [vmem:[%s3545_s1 + $0x1ec] ss:$16 sps:$4 sm:$0xff]  }
  0x26   :  { %v35_v23 = vld [vmem:[%s3546_s0 + $0x70] sm:$0xff]  ;;  %v37_v24 = vld [vmem:[%s3546_s0 + $0x80] sm:$0xff] }
  0x27   :  { %1280 = vmatpush2.bf16.msra.mxu0 %v2403_v38  ;;  %v2452_v25 = vld [vmem:[%s3545_s1 + $0x4a4] ss:$16 sps:$4 sm:$0xff]   ;;  %v2972_v26 = vpack.c.bf16 %v35_v23, %v35_v23  ;;  %v2974_v27 = vpack.c.bf16 %v37_v24, %v37_v24  ;;  %v2450_v28 = vld [vmem:[%s3545_s1 + $0x4a0] ss:$16 sps:$4 sm:$0xff]   ;;  %v2464_v38 = vld [vmem:[%s3545_s1 + $0xcc] ss:$16 sps:$4 sm:$0xff]  }
  0x28   :  { %1331 = vmatpush2.bf16.msra.mxu1 %v2404_v39  ;;  %1281 = vmatprep.subr.bf16.mxu0 %v2405_v40  ;;  %v2455_v29 = vld [vmem:[%s3545_s1 + $0x484] ss:$16 sps:$4 sm:$0xff]   ;;  %v2453_v30 = vld [vmem:[%s3545_s1 + $0x480] ss:$16 sps:$4 sm:$0xff]   ;;  %v2462_v40 = vld [vmem:[%s3545_s1 + $0xc8] ss:$16 sps:$4 sm:$0xff]  }
  0x29   :  { %1332 = vmatprep.subr.bf16.mxu1 %v2407_v41  ;;  %v27_v32 = vld [vmem:[%s3546_s0 + $0x30] sm:$0xff]  ;;  %v2524_v24 = vld [vmem:[%s3545_s1 + $0x18c] ss:$16 sps:$4 sm:$0xff]  }
  0x2a   :  { %v2461_v34 = vld [vmem:[%s3545_s1 + $0x464] ss:$16 sps:$4 sm:$0xff]   ;;  %v2997_v35 = vpack.c.bf16 %v34_v33, %v27_v32  ;;  %v2459_v37 = vld [vmem:[%s3545_s1 + $0x460] ss:$16 sps:$4 sm:$0xff]   ;;  %v32_v32 = vld [vmem:[%s3546_s0 + $0x58] sm:$0xff] }
  0x2b   :  { %1282 = vmatpush2.bf16.msra.mxu0 %v2409_v42  ;;  %v2467_v39 = vld [vmem:[%s3545_s1 + $0x444] ss:$16 sps:$4 sm:$0xff]   ;;  %v2465_v41 = vld [vmem:[%s3545_s1 + $0x440] ss:$16 sps:$4 sm:$0xff]   ;;  %v2470_v42 = vld [vmem:[%s3545_s1 + $0xac] ss:$16 sps:$4 sm:$0xff]  }
  0x2c   :  { %1333 = vmatpush2.bf16.msra.mxu1 %v2410_v43  ;;  %1283 = vmatprep.subr.bf16.mxu0 %v2411_v44  ;;  %v2473_v43 = vld [vmem:[%s3545_s1 + $0x424] ss:$16 sps:$4 sm:$0xff]   ;;  %v26_v44 = vld [vmem:[%s3546_s0 + $0x28] sm:$0xff]  ;;  %v2471_v48 = vld [vmem:[%s3545_s1 + $0x420] ss:$16 sps:$4 sm:$0xff]  }
  0x2d   :  { %1334 = vmatprep.subr.bf16.mxu1 %v2413_v45  ;;  %v33_v45 = vld [vmem:[%s3546_s0 + $0x60] sm:$0xff]  ;;  %v2530_v33 = vld [vmem:[%s3545_s1 + $0x16c] ss:$16 sps:$4 sm:$0xff]  }
  0x2e   :  { %v3032_v46 = vpack.c.bf16 %v33_v45, %v26_v44  ;;  %v2501_v7 = vld [vmem:[%s3545_s1 + $0x580] ss:$16 sps:$4 sm:$0xff]   ;;  %v2509_v9 = vld [vmem:[%s3545_s1 + $0x564] ss:$16 sps:$4 sm:$0xff]   ;;  %v2537_v44 = vld [vmem:[%s3545_s1 + $0x2c8] ss:$16 sps:$4 sm:$0xff]  }
  0x2f   :  { %1284 = vmatpush2.bf16.msra.mxu0 %v2415_v50  ;;  %v2479_v50 = vld [vmem:[%s3545_s1 + $0x404] ss:$16 sps:$4 sm:$0xff]   ;;  %v2519_v23 = vld [vmem:[%s3545_s1 + $0x520] ss:$16 sps:$4 sm:$0xff]  }
  0x30   :  { %1335 = vmatpush2.bf16.msra.mxu1 %v2416_v51  ;;  %1285 = vmatprep.subr.bf16.mxu0 %v2417_v52  ;;  %v41_v51 = vld [vmem:[%s3546_s0 + $0xa0] sm:$0xff]  ;;  %v2474_v52 = vld [vmem:[%s3545_s1 + $0x88] ss:$16 sps:$4 sm:$0xff]   ;;  %v39_v45 = vld [vmem:[%s3546_s0 + $0x90] sm:$0xff] }
  0x31   :  { %1336 = vmatprep.subr.bf16.mxu1 %v2419_v55  ;;  %v3053_v55 = vpack.c.bf16 %v41_v51, %v41_v51  ;;  %v2515_v15 = vld [vmem:[%s3545_s1 + $0x544] ss:$16 sps:$4 sm:$0xff]   ;;  %v2543_v51 = vld [vmem:[%s3545_s1 + $0x2a8] ss:$16 sps:$4 sm:$0xff]  }
  0x33   :  { %1286 = vmatpush2.bf16.msra.mxu0 %v2421_v56  ;;  %v2477_v56 = vld [vmem:[%s3545_s1 + $0x400] ss:$16 sps:$4 sm:$0xff]  }
  0x34   :  { %1337 = vmatpush2.bf16.msra.mxu1 %v2422_v57  ;;  %1287 = vmatprep.subr.bf16.mxu0 %v2423_v58  ;;  %v2482_v57 = vld [vmem:[%s3545_s1 + $0x6c] ss:$16 sps:$4 sm:$0xff]   ;;  %v2485_v58 = vld [vmem:[%s3545_s1 + $0x5e4] ss:$16 sps:$4 sm:$0xff]  }
  0x35   :  { %1338 = vmatprep.subr.bf16.mxu1 %v2425_v59  ;;  %v2480_v59 = vld [vmem:[%s3545_s1 + $0x68] ss:$16 sps:$4 sm:$0xff]  }
  0x37   :  { %1288 = vmatpush2.bf16.msra.mxu0 %v2427_v60  ;;  %v2483_v60 = vld [vmem:[%s3545_s1 + $0x5e0] ss:$16 sps:$4 sm:$0xff]  }
  0x38   :  { %1339 = vmatpush2.bf16.msra.mxu1 %v2428_v61  ;;  %1289 = vmatprep.subr.bf16.mxu0 %v2429_v62  ;;  %v2488_v61 = vld [vmem:[%s3545_s1 + $0x4c] ss:$16 sps:$4 sm:$0xff]   ;;  %v2491_v62 = vld [vmem:[%s3545_s1 + $0x5c4] ss:$16 sps:$4 sm:$0xff]  }
  0x39   :  { %1340 = vmatprep.subr.bf16.mxu1 %v2431_v63  ;;  %v2489_v63 = vld [vmem:[%s3545_s1 + $0x5c0] ss:$16 sps:$4 sm:$0xff]  }
  0x3b   :  { %1290 = vmatpush2.bf16.msra.mxu0 %v2433_v0  ;;  %v2494_v0 = vld [vmem:[%s3545_s1 + $0x2c] ss:$16 sps:$4 sm:$0xff]  }
  0x3c   :  { %1341 = vmatpush2.bf16.msra.mxu1 %v2434_v1  ;;  %1291 = vmatprep.subr.bf16.mxu0 %v2435_v2  ;;  %v2497_v1 = vld [vmem:[%s3545_s1 + $0x5a4] ss:$16 sps:$4 sm:$0xff]   ;;  %v2492_v2 = vld [vmem:[%s3545_s1 + $0x28] ss:$16 sps:$4 sm:$0xff]  }
  0x3d   :  { %1342 = vmatprep.subr.bf16.mxu1 %v2437_v3  ;;  %v2495_v3 = vld [vmem:[%s3545_s1 + $0x5a0] ss:$16 sps:$4 sm:$0xff]  }
  0x3f   :  { %1292 = vmatpush2.bf16.msra.mxu0 %v2439_v4  ;;  %v2500_v4 = vld [vmem:[%s3545_s1 + $0xc] ss:$16 sps:$4 sm:$0xff]  }
  0x40   :  { %1343 = vmatpush2.bf16.msra.mxu1 %v2440_v5  ;;  %1363 = vmatprep.subr.bf16.mxu0 %v2443_v10  ;;  %v2503_v5 = vld [vmem:[%s3545_s1 + $0x584] ss:$16 sps:$4 sm:$0xff]   ;;  %v2504_v10 = vld [vmem:[%s3545_s1 + $0x1e8] ss:$16 sps:$4 sm:$0xff]  }
  0x41   :  { %1428 = vmatprep.subr.bf16.mxu1 %v2446_v11  ;;  %v2507_v11 = vld [vmem:[%s3545_s1 + $0x560] ss:$16 sps:$4 sm:$0xff]  }
  0x42   :  { %1294 = vmatmul.mubr.bf16.vlgmr.msra.gmra.mxu0 %v2933_v13 }
  0x43   :  { %1345 = vmatmul.mubr.bf16.vlgmr.msra.gmra.mxu1 %v2935_v14  ;;  %1364 = vmatpush1.bf16.msra.mxu0 %v2441_v16  ;;  %v2510_v16 = vld [vmem:[%s3545_s1 + $0x1c8] ss:$16 sps:$4 sm:$0xff]  }
  0x44   :  { %1429 = vmatpush1.bf16.msra.mxu1 %v2444_v17  ;;  %1365 = vmatprep.subr.bf16.mxu0 %v2449_v18  ;;  %v2513_v17 = vld [vmem:[%s3545_s1 + $0x540] ss:$16 sps:$4 sm:$0xff]   ;;  %v2518_v18 = vld [vmem:[%s3545_s1 + $0x1ac] ss:$16 sps:$4 sm:$0xff]  }
  0x45   :  { %1303 = vmatprep.mubr.bf16.mxu0 %v2949_v19  ;;  %1354 = vmatprep.mubr.bf16.mxu1 %v2951_v20 }
  0x46   :  { %1465 = vmatprep.subr.bf16.mxu1 %v2458_v21  ;;  %v2521_v21 = vld [vmem:[%s3545_s1 + $0x524] ss:$16 sps:$4 sm:$0xff]  }
  0x47   :  { %1366 = vmatpush1.bf16.msra.mxu0 %v2447_v22  ;;  %v2516_v22 = vld [vmem:[%s3545_s1 + $0x1a8] ss:$16 sps:$4 sm:$0xff]  }
  0x48   :  { %1367 = vmatprep.subr.bf16.mxu0 %v2452_v25  ;;  %v2527_v25 = vld [vmem:[%s3545_s1 + $0x504] ss:$16 sps:$4 sm:$0xff]  }
  0x4a   :  { %1304 = vmatmul.mubr.bf16.gmra.mxu0 %v2972_v26 }
  0x4b   :  { %1355 = vmatmul.mubr.bf16.gmra.mxu1 %v2974_v27  ;;  %1368 = vmatpush1.bf16.msra.mxu0 %v2450_v28  ;;  %v2522_v28 = vld [vmem:[%s3545_s1 + $0x188] ss:$16 sps:$4 sm:$0xff]  }
  0x4c   :  { %1446 = vmatprep.mubr.bf16.mxu1 %v2671_v31  ;;  %1369 = vmatprep.subr.bf16.mxu0 %v2455_v29  ;;  %v2525_v29 = vld [vmem:[%s3545_s1 + $0x500] ss:$16 sps:$4 sm:$0xff]  }
  0x4d   :  { %1395 = vmatprep.mubr.bf16.mxu0 %v3032_v46 }
  0x4f   :  { %1370 = vmatpush1.bf16.msra.mxu0 %v2453_v30  ;;  %v25_v30 = vld [vmem:[%s3546_s0 + $0x20] sm:$0xff] }
  0x50   :  { %1371 = vmatprep.subr.bf16.mxu0 %v2461_v34  ;;  %v2533_v34 = vld [vmem:[%s3545_s1 + $0x2ec] ss:$16 sps:$4 sm:$0xff]  }
  0x53   :  { %2251 = vmatmul.mubr.msk.bf16.vlgmr.msra.gmra.mxu1 %vm1254_vm0, %v2997_v35  ;;  %1372 = vmatpush1.bf16.msra.mxu0 %v2459_v37  ;;  %v3172_v37 = vpack.c.bf16 %v32_v32, %v25_v30  ;;  %v2603_v30 = vld [vmem:[%s3545_s1 + $0x368] ss:$16 sps:$4 sm:$0xff]   ;;  %v2608_v32 = vld [vmem:[%s3545_s1 + $0x5cc] ss:$16 sps:$4 sm:$0xff]  }
  0x54   :  { %1466 = vmatpush1.bf16.msra.mxu1 %v2456_v36  ;;  %1373 = vmatprep.subr.bf16.mxu0 %v2467_v39  ;;  %v2528_v36 = vld [vmem:[%s3545_s1 + $0x168] ss:$16 sps:$4 sm:$0xff]  }
  0x55   :  { %1467 = vmatprep.subr.bf16.mxu1 %v2464_v38  ;;  %1456 = vmatprep.mubr.bf16.mxu1 %v2671_v31  ;;  %v40_v38 = vld [vmem:[%s3546_s0 + $0x98] sm:$0xff] }
  0x56   :  { %v2531_v39 = vld [vmem:[%s3545_s1 + $0x2e8] ss:$16 sps:$4 sm:$0xff]  }
  0x57   :  { %1374 = vmatpush1.bf16.msra.mxu0 %v2465_v41  ;;  %v2539_v41 = vld [vmem:[%s3545_s1 + $0x2cc] ss:$16 sps:$4 sm:$0xff]  }
  0x58   :  { %1468 = vmatpush1.bf16.msra.mxu1 %v2462_v40  ;;  %1375 = vmatprep.subr.bf16.mxu0 %v2473_v43  ;;  %v2536_v40 = vld [vmem:[%s3545_s1 + $0x14c] ss:$16 sps:$4 sm:$0xff]   ;;  %v3189_v43 = vpack.c.bf16 %v40_v38, %v40_v38 }
  0x59   :  { %1469 = vmatprep.subr.bf16.mxu1 %v2470_v42  ;;  %v2534_v42 = vld [vmem:[%s3545_s1 + $0x148] ss:$16 sps:$4 sm:$0xff]   ;;  %v2614_v38 = vld [vmem:[%s3545_s1 + $0x5ac] ss:$16 sps:$4 sm:$0xff]  }
  0x5b   :  { %1376 = vmatpush1.bf16.msra.mxu0 %v2471_v48  ;;  %2252 = vmatmul.mubr.msk.bf16.gmra.mxu1 %vm1254_vm0, %v3053_v55  ;;  %v2545_v48 = vld [vmem:[%s3545_s1 + $0x2ac] ss:$16 sps:$4 sm:$0xff]  }
  0x5c   :  { %1470 = vmatpush1.bf16.msra.mxu1 %v2468_v47  ;;  %1377 = vmatprep.subr.bf16.mxu0 %v2479_v50  ;;  %v2542_v47 = vld [vmem:[%s3545_s1 + $0x12c] ss:$16 sps:$4 sm:$0xff]   ;;  %v3208_v50 = vpack.c.bf16 %v39_v45, %v39_v45  ;;  %v2618_v45 = vld [vmem:[%s3545_s1 + $0x588] ss:$16 sps:$4 sm:$0xff]  }
  0x5d   :  { %1471 = vmatprep.subr.bf16.mxu1 %v2476_v49  ;;  %1497 = vmatprep.mubr.bf16.mxu1 %v2861_v53  ;;  %v2486_v53 = vld [vmem:[%s3545_s1 + $0x48] ss:$16 sps:$4 sm:$0xff]  }
  0x5e   :  { %v2540_v49 = vld [vmem:[%s3545_s1 + $0x128] ss:$16 sps:$4 sm:$0xff]  }
  0x5f   :  { %1378 = vmatpush1.bf16.msra.mxu0 %v2477_v56  ;;  %v2551_v56 = vld [vmem:[%s3545_s1 + $0x28c] ss:$16 sps:$4 sm:$0xff]  }
  0x60   :  { %1472 = vmatpush1.bf16.msra.mxu1 %v2474_v52  ;;  %1379 = vmatprep.subr.bf16.mxu0 %v2485_v58  ;;  %v2548_v52 = vld [vmem:[%s3545_s1 + $0x10c] ss:$16 sps:$4 sm:$0xff]   ;;  %v2549_v58 = vld [vmem:[%s3545_s1 + $0x288] ss:$16 sps:$4 sm:$0xff]  }
  0x61   :  { %1473 = vmatprep.subr.bf16.mxu1 %v2482_v57  ;;  %v2546_v57 = vld [vmem:[%s3545_s1 + $0x108] ss:$16 sps:$4 sm:$0xff]  }
  0x63   :  { %1380 = vmatpush2.bf16.msra.mxu0 %v2483_v60  ;;  %v2557_v60 = vld [vmem:[%s3545_s1 + $0x26c] ss:$16 sps:$4 sm:$0xff]  }
  0x64   :  { %1474 = vmatpush1.bf16.msra.mxu1 %v2480_v59  ;;  %1381 = vmatprep.subr.bf16.mxu0 %v2491_v62  ;;  %v2554_v59 = vld [vmem:[%s3545_s1 + $0x4ec] ss:$16 sps:$4 sm:$0xff]   ;;  %v2555_v62 = vld [vmem:[%s3545_s1 + $0x268] ss:$16 sps:$4 sm:$0xff]  }
  0x65   :  { %1475 = vmatprep.subr.bf16.mxu1 %v2488_v61  ;;  %v2552_v61 = vld [vmem:[%s3545_s1 + $0x4e8] ss:$16 sps:$4 sm:$0xff]  }
  0x67   :  { %1382 = vmatpush2.bf16.msra.mxu0 %v2489_v63  ;;  %v2558_v63 = vld [vmem:[%s3545_s1 + $0x4c8] ss:$16 sps:$4 sm:$0xff]  }
  0x68   :  { %1476 = vmatpush1.bf16.msra.mxu1 %v2486_v53  ;;  %1383 = vmatprep.subr.bf16.mxu0 %v2497_v1  ;;  %v2560_v53 = vld [vmem:[%s3545_s1 + $0x4cc] ss:$16 sps:$4 sm:$0xff]  }
  0x69   :  { %1477 = vmatprep.subr.bf16.mxu1 %v2494_v0  ;;  %v2561_v0 = vld [vmem:[%s3545_s1 + $0x248] ss:$16 sps:$4 sm:$0xff]   ;;  %v2566_v1 = vld [vmem:[%s3545_s1 + $0x4ac] ss:$16 sps:$4 sm:$0xff]  }
  0x6b   :  { %1384 = vmatpush2.bf16.msra.mxu0 %v2495_v3  ;;  %v2567_v3 = vld [vmem:[%s3545_s1 + $0x228] ss:$16 sps:$4 sm:$0xff]  }
  0x6c   :  { %1478 = vmatpush1.bf16.msra.mxu1 %v2492_v2  ;;  %1385 = vmatprep.subr.bf16.mxu0 %v2503_v5  ;;  %v2564_v2 = vld [vmem:[%s3545_s1 + $0x4a8] ss:$16 sps:$4 sm:$0xff]  }
  0x6d   :  { %1479 = vmatprep.subr.bf16.mxu1 %v2500_v4  ;;  %v2572_v4 = vld [vmem:[%s3545_s1 + $0x48c] ss:$16 sps:$4 sm:$0xff]   ;;  %v2570_v5 = vld [vmem:[%s3545_s1 + $0x488] ss:$16 sps:$4 sm:$0xff]  }
  0x6f   :  { %1386 = vmatpush2.bf16.msra.mxu0 %v2501_v7  ;;  %v2578_v7 = vld [vmem:[%s3545_s1 + $0x46c] ss:$16 sps:$4 sm:$0xff]  }
  0x70   :  { %1480 = vmatpush1.bf16.msra.mxu1 %v2498_v6  ;;  %1387 = vmatprep.subr.bf16.mxu0 %v2509_v9  ;;  %v2573_v6 = vld [vmem:[%s3545_s1 + $0x208] ss:$16 sps:$4 sm:$0xff]  }
  0x71   :  { %1481 = vmatprep.subr.bf16.mxu1 %v2506_v8  ;;  %v2581_v8 = vld [vmem:[%s3545_s1 + $0x3ec] ss:$16 sps:$4 sm:$0xff]   ;;  %v2576_v9 = vld [vmem:[%s3545_s1 + $0x468] ss:$16 sps:$4 sm:$0xff]  }
  0x73   :  { %1388 = vmatpush2.bf16.msra.mxu0 %v2507_v11  ;;  %v2587_v11 = vld [vmem:[%s3545_s1 + $0x3cc] ss:$16 sps:$4 sm:$0xff]  }
  0x74   :  { %1482 = vmatpush2.bf16.msra.mxu1 %v2504_v10  ;;  %1389 = vmatprep.subr.bf16.mxu0 %v2515_v15  ;;  %v2584_v10 = vld [vmem:[%s3545_s1 + $0x44c] ss:$16 sps:$4 sm:$0xff]  }
  0x75   :  { %1483 = vmatprep.subr.bf16.mxu1 %v2512_v12  ;;  %v2585_v12 = vld [vmem:[%s3545_s1 + $0x3c8] ss:$16 sps:$4 sm:$0xff]   ;;  %v2590_v15 = vld [vmem:[%s3545_s1 + $0x42c] ss:$16 sps:$4 sm:$0xff]  }
  0x77   :  { %1390 = vmatpush2.bf16.msra.mxu0 %v2513_v17  ;;  %v2588_v17 = vld [vmem:[%s3545_s1 + $0x428] ss:$16 sps:$4 sm:$0xff]  }
  0x78   :  { %1484 = vmatpush2.bf16.msra.mxu1 %v2510_v16  ;;  %1391 = vmatprep.subr.bf16.mxu0 %v2521_v21  ;;  %v2593_v16 = vld [vmem:[%s3545_s1 + $0x3ac] ss:$16 sps:$4 sm:$0xff]  }
  0x79   :  { %1485 = vmatprep.subr.bf16.mxu1 %v2518_v18  ;;  %v2591_v18 = vld [vmem:[%s3545_s1 + $0x3a8] ss:$16 sps:$4 sm:$0xff]   ;;  %v2596_v21 = vld [vmem:[%s3545_s1 + $0x40c] ss:$16 sps:$4 sm:$0xff]  }
  0x7b   :  { %1392 = vmatpush2.bf16.msra.mxu0 %v2519_v23  ;;  %v2594_v23 = vld [vmem:[%s3545_s1 + $0x408] ss:$16 sps:$4 sm:$0xff]  }
  0x7c   :  { %1486 = vmatpush2.bf16.msra.mxu1 %v2516_v22  ;;  %1393 = vmatprep.subr.bf16.mxu0 %v2527_v25  ;;  %v2599_v22 = vld [vmem:[%s3545_s1 + $0x38c] ss:$16 sps:$4 sm:$0xff]  }
  0x7d   :  { %1487 = vmatprep.subr.bf16.mxu1 %v2524_v24  ;;  %v2597_v24 = vld [vmem:[%s3545_s1 + $0x388] ss:$16 sps:$4 sm:$0xff]   ;;  %v2602_v25 = vld [vmem:[%s3545_s1 + $0x5ec] ss:$16 sps:$4 sm:$0xff]  }
  0x7f   :  { %1394 = vmatpush2.bf16.msra.mxu0 %v2525_v29  ;;  %v2600_v29 = vld [vmem:[%s3545_s1 + $0x5e8] ss:$16 sps:$4 sm:$0xff]  }
  0x80   :  { %1488 = vmatpush2.bf16.msra.mxu1 %v2522_v28  ;;  %1516 = vmatprep.subr.bf16.mxu0 %v2533_v34  ;;  %v2605_v28 = vld [vmem:[%s3545_s1 + $0x36c] ss:$16 sps:$4 sm:$0xff]   ;;  %v2606_v34 = vld [vmem:[%s3545_s1 + $0x5c8] ss:$16 sps:$4 sm:$0xff]  }
  0x81   :  { %1489 = vmatprep.subr.bf16.mxu1 %v2530_v33  ;;  %v2611_v33 = vld [vmem:[%s3545_s1 + $0x34c] ss:$16 sps:$4 sm:$0xff]  }
  0x82   :  { %1396 = vmatmul.mubr.bf16.vlgmr.msra.gmra.mxu0 %v3172_v37 }
  0x83   :  { %1517 = vmatpush1.bf16.msra.mxu0 %v2531_v39  ;;  %1405 = vmatprep.mubr.bf16.mxu0 %v3189_v43  ;;  %v2617_v39 = vld [vmem:[%s3545_s1 + $0x32c] ss:$16 sps:$4 sm:$0xff]  }
  0x84   :  { %1490 = vmatpush2.bf16.msra.mxu1 %v2528_v36  ;;  %1518 = vmatprep.subr.bf16.mxu0 %v2539_v41  ;;  %v2609_v36 = vld [vmem:[%s3545_s1 + $0x348] ss:$16 sps:$4 sm:$0xff]  }
  0x85   :  { %1491 = vmatprep.subr.bf16.mxu1 %v2536_v40  ;;  %v2612_v40 = vld [vmem:[%s3545_s1 + $0x5a8] ss:$16 sps:$4 sm:$0xff]  }
  0x86   :  { %v2615_v41 = vld [vmem:[%s3545_s1 + $0x328] ss:$16 sps:$4 sm:$0xff]  }
  0x87   :  { %1519 = vmatpush1.bf16.msra.mxu0 %v2537_v44  ;;  %v2623_v44 = vld [vmem:[%s3545_s1 + $0x30c] ss:$16 sps:$4 sm:$0xff]  }
  0x88   :  { %1492 = vmatpush2.bf16.msra.mxu1 %v2534_v42  ;;  %1520 = vmatprep.subr.bf16.mxu0 %v2545_v48  ;;  %v2620_v42 = vld [vmem:[%s3545_s1 + $0x58c] ss:$16 sps:$4 sm:$0xff]  }
  0x89   :  { %1493 = vmatprep.subr.bf16.mxu1 %v2542_v47  ;;  %v2621_v47 = vld [vmem:[%s3545_s1 + $0x308] ss:$16 sps:$4 sm:$0xff]   ;;  %v2626_v48 = vld [vmem:[%s3545_s1 + $0x56c] ss:$16 sps:$4 sm:$0xff]  }
  0x8a   :  { %1406 = vmatmul.mubr.bf16.gmra.mxu0 %v3208_v50 }
  0x8b   :  { %1521 = vmatpush1.bf16.msra.mxu0 %v2543_v51  ;;  %1548 = vmatprep.mubr.bf16.mxu0 %v2863_v54  ;;  %v2563_v54 = vld [vmem:[%s3545_s1 + $0x24c] ss:$16 sps:$4 sm:$0xff]   ;;  %v2624_v51 = vld [vmem:[%s3545_s1 + $0x568] ss:$16 sps:$4 sm:$0xff]  }
  0x8c   :  { %1494 = vmatpush2.bf16.msra.mxu1 %v2540_v49  ;;  %1522 = vmatprep.subr.bf16.mxu0 %v2551_v56  ;;  %v2629_v49 = vld [vmem:[%s3545_s1 + $0x60c] ss:$16 sps:$4 sm:$0xff]  }
  0x8d   :  { %1495 = vmatprep.subr.bf16.mxu1 %v2548_v52  ;;  %v2627_v52 = vld [vmem:[%s3545_s1 + $0x608] ss:$16 sps:$4 sm:$0xff]   ;;  %v2632_v56 = vld [vmem:[%s3545_s1 + $0x54c] ss:$16 sps:$4 sm:$0xff]  }
  0x8f   :  { %1523 = vmatpush1.bf16.msra.mxu0 %v2549_v58  ;;  %v2630_v58 = vld [vmem:[%s3545_s1 + $0x548] ss:$16 sps:$4 sm:$0xff]  }
  0x90   :  { %1496 = vmatpush2.bf16.msra.mxu1 %v2546_v57  ;;  %1524 = vmatprep.subr.bf16.mxu0 %v2557_v60  ;;  %v2639_v57 = vld [vmem:[%s3547_s3 + $0x78] sm:$0xff]  }
  0x91   :  { %1567 = vmatprep.subr.bf16.mxu1 %v2554_v59  ;;  %v2635_v59 = vld [vmem:[%s3545_s1 + $0x52c] ss:$16 sps:$4 sm:$0xff]   ;;  %v2633_v60 = vld [vmem:[%s3545_s1 + $0x528] ss:$16 sps:$4 sm:$0xff]  }
  0x93   :  { %1498 = vmatmul.mubr.bf16.vlgmr.msra.gmra.mxu1 %v2933_v13  ;;  %1525 = vmatpush1.bf16.msra.mxu0 %v2555_v62  ;;  %v2569_v13 = vld [vmem:[%s3545_s1 + $0x22c] ss:$16 sps:$4 sm:$0xff]   ;;  %v2641_v62 = vld [vmem:[%s3547_s3 + $0x70] sm:$0xff]  }
  0x94   :  { %1568 = vmatpush1.bf16.msra.mxu1 %v2552_v61  ;;  %1526 = vmatprep.subr.bf16.mxu0 %v2563_v54  ;;  %v2640_v61 = vld [vmem:[%s3547_s3 + $0x38] sm:$0xff]  }
  0x95   :  { %1569 = vmatprep.subr.bf16.mxu1 %v2560_v53  ;;  %1507 = vmatprep.mubr.bf16.mxu1 %v2949_v19  ;;  %v2575_v19 = vld [vmem:[%s3545_s1 + $0x20c] ss:$16 sps:$4 sm:$0xff]  }
  0x96   :  { %v2643_v53 = vld [vmem:[%s3547_s3 + $0x68] sm:$0xff]   ;;  %v2647_v54 = vld [vmem:[%s3547_s3 + $0x58] sm:$0xff]  }
  0x97   :  { %1527 = vmatpush1.bf16.msra.mxu0 %v2561_v0  ;;  %v2651_v0 = vld [vmem:[%s3547_s3 + $0x48] sm:$0xff]  }
  0x98   :  { %1570 = vmatpush1.bf16.msra.mxu1 %v2558_v63  ;;  %1528 = vmatprep.subr.bf16.mxu0 %v2569_v13  ;;  %v2650_v63 = vld [vmem:[%s3547_s3 + $0x10] sm:$0xff]   ;;  %v2653_v13 = vld [vmem:[%s3547_s3 + $0x40] sm:$0xff]  }
  0x99   :  { %1571 = vmatprep.subr.bf16.mxu1 %v2566_v1  ;;  %v2652_v1 = vld [vmem:[%s3547_s3 + $0x8] sm:$0xff]  }
  0x9b   :  { %1508 = vmatmul.mubr.bf16.gmra.mxu1 %v2972_v26  ;;  %1529 = vmatpush1.bf16.msra.mxu0 %v2567_v3  ;;  %v2579_v26 = vld [vmem:[%s3545_s1 + $0x3e8] ss:$16 sps:$4 sm:$0xff]   ;;  %v254_v3 = vlaneseq }
  0x9c   :  { %1572 = vmatpush1.bf16.msra.mxu1 %v2564_v2  ;;  %1530 = vmatprep.subr.bf16.mxu0 %v2575_v19  ;;  %v2654_v2 = vld [vmem:[%s3547_s3] sm:$0xff]  }
  0x9d   :  { %1573 = vmatprep.subr.bf16.mxu1 %v2572_v4  ;;  %1599 = vmatprep.mubr.bf16.mxu1 %v3032_v46  ;;  %v2582_v46 = vld [vmem:[%s3545_s1 + $0x448] ss:$16 sps:$4 sm:$0xff]   ;;  %v3468_v4 = vshrl.u32 %v254_v3, 7 }
  0x9f   :  { %1531 = vmatpush1.bf16.msra.mxu0 %v2573_v6  ;;  %v256_v19 = vsub.s32 0, %v3468_v4  ;;  %v260_v6 = vsub.s32 1, %v3468_v4 }
  0xa0   :  { %1574 = vmatpush1.bf16.msra.mxu1 %v2570_v5  ;;  %1532 = vmatprep.subr.bf16.mxu0 %v2581_v8  ;;  %v3474_v5 = vld [vmem:[%s3548_s2] sm:$0xf] }
  0xa1   :  { %1575 = vmatprep.subr.bf16.mxu1 %v2578_v7  ;;  %v257_v7 = vrot.slane %v3474_v5, %v256_v19  ;;  %v3479_v8 = vrot.slane %v3474_v5, %v260_v6 }
  0xa3   :  { %1533 = vmatpush2.bf16.msra.mxu0 %v2579_v26 }
  0xa4   :  { %1576 = vmatpush1.bf16.msra.mxu1 %v2576_v9  ;;  %1534 = vmatprep.subr.bf16.mxu0 %v2587_v11  ;;  %v2656_v9 = vld [vmem:[%s3547_s3 + $0xb8] sm:$0xff]  }
  0xa5   :  { %1577 = vmatprep.subr.bf16.mxu1 %v2584_v10 }
  0xa7   :  { %1535 = vmatpush2.bf16.msra.mxu0 %v2585_v12 }
  0xa8   :  { %1578 = vmatpush1.bf16.msra.mxu1 %v2582_v46  ;;  %1536 = vmatprep.subr.bf16.mxu0 %v2593_v16 }
  0xa9   :  { %1579 = vmatprep.subr.bf16.mxu1 %v2590_v15  ;;  %v2657_v15 = vld [vmem:[%s3547_s3 + $0xf0] sm:$0xff]  }
  0xab   :  { %1537 = vmatpush2.bf16.msra.mxu0 %v2591_v18  ;;  %v2658_v18 = vld [vmem:[%s3547_s3 + $0xb0] sm:$0xff]  }
  0xac   :  { %1580 = vmatpush1.bf16.msra.mxu1 %v2588_v17  ;;  %1538 = vmatprep.subr.bf16.mxu0 %v2599_v22 }
  0xad   :  { %1581 = vmatprep.subr.bf16.mxu1 %v2596_v21 }
  0xaf   :  { %1539 = vmatpush2.bf16.msra.mxu0 %v2597_v24 }
  0xb0   :  { %1582 = vmatpush1.bf16.msra.mxu1 %v2594_v23  ;;  %1540 = vmatprep.subr.bf16.mxu0 %v2605_v28  ;;  %v2659_v28 = vld [vmem:[%s3547_s3 + $0xe8] sm:$0xff]  }
  0xb1   :  { %1583 = vmatprep.subr.bf16.mxu1 %v2602_v25 }
  0xb3   :  { %1541 = vmatpush2.bf16.msra.mxu0 %v2603_v30 }
  0xb4   :  { %1584 = vmatpush2.bf16.msra.mxu1 %v2600_v29  ;;  %1542 = vmatprep.subr.bf16.mxu0 %v2611_v33  ;;  %v2660_v29 = vld [vmem:[%s3547_s3 + $0xa8] sm:$0xff]  }
  0xb5   :  { %1585 = vmatprep.subr.bf16.mxu1 %v2608_v32 }
  0xb7   :  { %1543 = vmatpush2.bf16.msra.mxu0 %v2609_v36 }
  0xb8   :  { %1586 = vmatpush2.bf16.msra.mxu1 %v2606_v34  ;;  %1544 = vmatprep.subr.bf16.mxu0 %v2617_v39 }
  0xb9   :  { %1587 = vmatprep.subr.bf16.mxu1 %v2614_v38  ;;  %v2661_v38 = vld [vmem:[%s3547_s3 + $0xe0] sm:$0xff]  }
  0xbb   :  { %1545 = vmatpush2.bf16.msra.mxu0 %v2615_v41 }
  0xbc   :  { %1588 = vmatpush2.bf16.msra.mxu1 %v2612_v40  ;;  %1546 = vmatprep.subr.bf16.mxu0 %v2623_v44  ;;  %v2662_v40 = vld [vmem:[%s3547_s3 + $0xa0] sm:$0xff]  }
  0xbd   :  { %1589 = vmatprep.subr.bf16.mxu1 %v2620_v42 }
  0xbf   :  { %1547 = vmatpush2.bf16.msra.mxu0 %v2621_v47  ;;  %v2663_v47 = vld [vmem:[%s3547_s3 + $0xd8] sm:$0xff]  }
  0xc0   :  { %1590 = vmatpush2.bf16.msra.mxu1 %v2618_v45  ;;  %1632 = vmatprep.subr.bf16.mxu0 %v2629_v49 }
  0xc1   :  { %1591 = vmatprep.subr.bf16.mxu1 %v2626_v48  ;;  %v2664_v48 = vld [vmem:[%s3547_s3 + $0x98] sm:$0xff]  }
  0xc2   :  { %1549 = vmatmul.mubr.bf16.vlgmr.msra.gmra.mxu0 %v2935_v14  ;;  %v2638_v14 = vld [vmem:[%s3545_s1 + $0x50c] ss:$16 sps:$4 sm:$0xff]  }
  0xc3   :  { %1633 = vmatpush1.bf16.msra.mxu0 %v2627_v52  ;;  %1558 = vmatprep.mubr.bf16.mxu0 %v2951_v20  ;;  %v2636_v20 = vld [vmem:[%s3545_s1 + $0x508] ss:$16 sps:$4 sm:$0xff]   ;;  %v2665_v52 = vld [vmem:[%s3547_s3 + $0xd0] sm:$0xff]  }
  0xc4   :  { %1592 = vmatpush2.bf16.msra.mxu1 %v2624_v51  ;;  %2288 = vmatprep.subr.bf16.mxu0 %v2639_v57 }
  0xc5   :  { %1593 = vmatprep.subr.bf16.mxu1 %v2632_v56  ;;  %v2666_v56 = vld [vmem:[%s3547_s3 + $0x90] sm:$0xff]  }
  0xc8   :  { %1594 = vmatpush2.bf16.msra.mxu1 %v2630_v58  ;;  %v2667_v58 = vld [vmem:[%s3547_s3 + $0xc8] sm:$0xff]  }
  0xc9   :  { %1595 = vmatprep.subr.bf16.mxu1 %v2635_v59  ;;  %v2668_v59 = vld [vmem:[%s3547_s3 + $0x88] sm:$0xff]  }
  0xca   :  { %1559 = vmatmul.mubr.bf16.gmra.mxu0 %v2974_v27  ;;  %v2642_v27 = vld [vmem:[%s3547_s3 + $0x30] sm:$0xff]  }
  0xcb   :  { %1650 = vmatprep.mubr.bf16.mxu0 %v2671_v31 }
  0xcc   :  { %1596 = vmatpush2.bf16.msra.mxu1 %v2633_v60 }
  0xcd   :  { %1597 = vmatprep.subr.bf16.mxu1 %v2638_v14  ;;  %v2669_v14 = vld [vmem:[%s3547_s3 + $0xc0] sm:$0xff]  }
  0xd0   :  { %1598 = vmatpush2.bf16.msra.mxu1 %v2636_v20 }
  0xd2   :  { %2253 = vmatmul.mubr.msk.bf16.vlgmr.msra.gmra.mxu0 %vm1254_vm0, %v2997_v35  ;;  %v2655_v35 = vld [vmem:[%s3547_s3 + $0xf8] sm:$0xff]  }
  0xd3   :  { %1600 = vmatmul.mubr.bf16.vlgmr.msra.gmra.mxu1 %v3172_v37  ;;  %1660 = vmatprep.mubr.bf16.mxu0 %v2671_v31  ;;  %v2644_v37 = vld [vmem:[%s3547_s3 + $0x28] sm:$0xff]   ;;  %v2645_v31 = vld [vmem:[%s3547_s3 + $0x60] sm:$0xff]  }
  0xd4   :  { %1609 = vmatprep.mubr.bf16.mxu1 %v3189_v43  ;;  %2289 = vmatpush3.bf16.msra.mxu0 %v2640_v61  ;;  %v2646_v43 = vld [vmem:[%s3547_s3 + $0x20] sm:$0xff]  }
  0xd5   :  { %2290 = vmatprep.subr.bf16.mxu0 %v2641_v62  ;;  %2316 = vmatprep.subr.bf16.mxu1 %v2655_v35  ;;  %v2670_v61 = vld [vmem:[%s3547_s3 + $0x80] sm:$0xff]  }
  0xd6   :  { %2317 = vmatpush3.bf16.msra.mxu1 %v2656_v9 }
  0xd7   :  { %2318 = vmatprep.subr.bf16.mxu1 %v2657_v15 }
  0xd8   :  { %2291 = vmatpush3.bf16.msra.mxu0 %v2642_v27 }
  0xd9   :  { %2292 = vmatprep.subr.bf16.mxu0 %v2643_v53 }
  0xda   :  { %2254 = vmatmul.mubr.msk.bf16.gmra.mxu0 %vm1254_vm0, %v3053_v55  ;;  %v2648_v55 = vld [vmem:[%s3547_s3 + $0x18] sm:$0xff]   ;;  %2319 = vmatpush3.bf16.msra.mxu1 %v2658_v18 }
  0xdb   :  { %1610 = vmatmul.mubr.bf16.gmra.mxu1 %v3208_v50  ;;  %v2649_v50 = vld [vmem:[%s3547_s3 + $0x50] sm:$0xff]   ;;  %2320 = vmatprep.subr.bf16.mxu1 %v2659_v28 }
  0xdc   :  { %2293 = vmatpush3.bf16.msra.mxu0 %v2644_v37 }
  0xdd   :  { %2294 = vmatprep.subr.bf16.mxu0 %v2645_v31 }
  0xde   :  { %2321 = vmatpush3.bf16.msra.mxu1 %v2660_v29 }
  0xdf   :  { %2322 = vmatprep.subr.bf16.mxu1 %v2661_v38 }
  0xe0   :  { %2295 = vmatpush3.bf16.msra.mxu0 %v2646_v43 }
  0xe1   :  { %2296 = vmatprep.subr.bf16.mxu0 %v2647_v54 }
  0xe2   :  { %2323 = vmatpush3.bf16.msra.mxu1 %v2662_v40 }
  0xe3   :  { %2324 = vmatprep.subr.bf16.mxu1 %v2663_v47 }
  0xe4   :  { %2297 = vmatpush3.bf16.msra.mxu0 %v2648_v55 }
  0xe5   :  { %2298 = vmatprep.subr.bf16.mxu0 %v2649_v50 }
  0xe6   :  { %2325 = vmatpush3.bf16.msra.mxu1 %v2664_v48 }
  0xe7   :  { %2326 = vmatprep.subr.bf16.mxu1 %v2665_v52 }
  0xe8   :  { %2299 = vmatpush3.bf16.msra.mxu0 %v2650_v63 }
  0xe9   :  { %2300 = vmatprep.subr.bf16.mxu0 %v2651_v0 }
  0xea   :  { %2327 = vmatpush3.bf16.msra.mxu1 %v2666_v56 }
  0xeb   :  { %2328 = vmatprep.subr.bf16.mxu1 %v2667_v58 }
  0xec   :  { %2301 = vmatpush3.bf16.msra.mxu0 %v2652_v1 }
  0xed   :  { %2302 = vmatprep.subr.bf16.mxu0 %v2653_v13 }
  0xee   :  { %2329 = vmatpush3.bf16.msra.mxu1 %v2668_v59 }
  0xef   :  { %2330 = vmatprep.subr.bf16.mxu1 %v2669_v14 }
  0xf0   :  { %2303 = vmatpush3.bf16.msra.mxu0 %v2654_v2 }
  0xf2   :  { %2331 = vmatpush3.bf16.msra.mxu1 %v2670_v61 }
 0x102   :  { %v1295_v26 = vpop.f32.mrf.mxu0 }
 0x103   :  { %v1346_v10 = vpop.f32.mrf.mxu1  ;;  %v1296_v11 = vadd.f32 %v1295_v26, %v257_v7 }
 0x104   :  { %v1297_v46 = vpop.f32.mrf.mxu0 }
 0x105   :  { %v1348_v12 = vpop.f32.mrf.mxu1  ;;  %v1347_v16 = vadd.f32 %v1346_v10, %v1296_v11  ;;  %v1298_v17 = vadd.f32 %v1297_v46, %v3479_v8 }
 0x106   :  { %v1299_v21 = vpop.f32.mrf.mxu0 }
 0x107   :  { %v1350_v22 = vpop.f32.mrf.mxu1  ;;  %v1349_v23 = vadd.f32 %v1348_v12, %v1298_v17  ;;  %v1300_v37 = vadd.f32 %v1299_v21, %v257_v7 }
 0x108   :  { %v1301_v24 = vpop.f32.mrf.mxu0 }
 0x109   :  { %v1352_v25 = vpop.f32.mrf.mxu1  ;;  %v1302_v35 = vadd.f32 %v1301_v24, %v3479_v8  ;;  %v1351_v55 = vadd.f32 %v1350_v22, %v1300_v37 }
 0x10a   :  { %v1305_v30 = vpop.f32.mrf.mxu0 }
 0x10b   :  { %v1356_v32 = vpop.f32.mrf.mxu1  ;;  %v1306_v33 = vadd.f32 %v1305_v30, %v257_v7  ;;  %v1353_v0 = vadd.f32 %v1352_v25, %v1302_v35 }
 0x10c   :  { %v1307_v34 = vpop.f32.mrf.mxu0 }
 0x10d   :  { %v1358_v36 = vpop.f32.mrf.mxu1  ;;  %v1357_v39 = vadd.f32 %v1356_v32, %v1306_v33  ;;  %v1308_v1 = vadd.f32 %v1307_v34, %v3479_v8 }
 0x10e   :  { %v1309_v42 = vpop.f32.mrf.mxu0 }
 0x10f   :  { %v1360_v41 = vpop.f32.mrf.mxu1  ;;  %v1359_v10 = vadd.f32 %v1358_v36, %v1308_v1 }
 0x110   :  { %v1310_v45 = vpop.f32.mrf.mxu0 }
 0x111   :  { %v1361_v44 = vpop.f32.mrf.mxu1 }
 0x113   :  { %v1448_v49 = vpop.f32.mrf.mxu1 }
 0x115   :  { %v1450_v51 = vpop.f32.mrf.mxu1 }
 0x117   :  { %v1452_v57 = vpop.f32.mrf.mxu1 }
 0x119   :  { %v1454_v60 = vpop.f32.mrf.mxu1 }
 0x11b   :  { %v1458_v20 = vpop.f32.mrf.mxu1 }
 0x11d   :  { %v1460_v62 = vpop.f32.mrf.mxu1 }
 0x11f   :  { %v1462_v27 = vpop.f32.mrf.mxu1 }
 0x121   :  { %v1463_v53 = vpop.f32.mrf.mxu1 }
 0x142   :  { %v1397_v31 = vpop.f32.mrf.mxu0 }
 0x143   :  { %v1398_v43 = vadd.f32 %v1397_v31, %v1347_v16 }
 0x144   :  { %v1399_v54 = vpop.f32.mrf.mxu0 }
 0x145   :  { %v1400_v50 = vadd.f32 %v1399_v54, %v1349_v23  ;;  %v1449_v13 = vadd.f32 %v1448_v49, %v1398_v43  ;;  %v268_v49 = vsub.s32 3, %v3468_v4 }
 0x146   :  { %v1401_v63 = vpop.f32.mrf.mxu0 }
 0x147   :  { %v1402_v2 = vadd.f32 %v1401_v63, %v1351_v55  ;;  %v1451_v19 = vadd.f32 %v1450_v51, %v1400_v50  ;;  %v1669_v7 = vmax.f32 %v1449_v13, 0.0  ;;  %v264_v51 = vsub.s32 2, %v3468_v4 }
 0x148   :  { %v1403_v3 = vpop.f32.mrf.mxu0 }
 0x149   :  { %v1453_v6 = vadd.f32 %v1452_v57, %v1402_v2  ;;  %v1404_v9 = vadd.f32 %v1403_v3, %v1353_v0  ;;  %v1670_v16 = vmax.f32 %v1451_v19, 0.0  ;;  %v269_v57 = vrot.slane %v3474_v5, %v268_v49 }
 0x14a   :  { %v1407_v26 = vpop.f32.mrf.mxu0  ;;  %v265_v58 = vrot.slane %v3474_v5, %v264_v51 }
 0x14b   :  { %v1673_v11 = vmax.f32 %v1453_v6, 0.0  ;;  %v1455_v46 = vadd.f32 %v1454_v60, %v1404_v9  ;;  %v1408_v12 = vadd.f32 %v1407_v26, %v1357_v39 }
 0x14c   :  { %v1409_v15 = vpop.f32.mrf.mxu0 }
 0x14d   :  { %v1681_v17 = vpack.c.bf16 %v1673_v11, %v1669_v7  ;;  %v1674_v18 = vmax.f32 %v1455_v46, 0.0  ;;  %v1410_v21 = vadd.f32 %v1409_v15, %v1359_v10  ;;  %v1459_v24 = vadd.f32 %v1458_v20, %v1408_v12 }
 0x14e   :  { %v1411_v22 = vpop.f32.mrf.mxu0 }
 0x14f   :  { %v1461_v23 = vadd.f32 %v1460_v62, %v1410_v21  ;;  %v1682_v8 = vpack.c.bf16 %v1674_v18, %v1670_v16  ;;  %v1677_v32 = vmax.f32 %v1459_v24, 0.0 }
 0x150   :  { %v1412_v25 = vpop.f32.mrf.mxu0 }
 0x151   :  { %v1678_v28 = vmax.f32 %v1461_v23, 0.0  ;;  %1984 = vmatprep.mubr.bf16.mxu0 %v1682_v8  ;;  %v1685_v36 = vpack.c.bf16 %v1677_v32, %v1677_v32 }
 0x152   :  { %1985 = vmatmul.mubr.bf16.vlgmr.msra.gmra.mxu0 %v1681_v17 }
 0x153   :  { %v1499_v29 = vpop.f32.mrf.mxu1  ;;  %v1686_v30 = vpack.c.bf16 %v1678_v28, %v1678_v28 }
 0x154   :  { %v1500_v20 = vadd.f32 %v1499_v29, %v265_v58 }
 0x155   :  { %v1501_v33 = vpop.f32.mrf.mxu1  ;;  %1992 = vmatprep.mubr.bf16.mxu0 %v1686_v30 }
 0x156   :  { %v1502_v14 = vadd.f32 %v1501_v33, %v269_v57 }
 0x157   :  { %v1503_v34 = vpop.f32.mrf.mxu1 }
 0x158   :  { %v1504_v27 = vadd.f32 %v1503_v34, %v265_v58 }
 0x159   :  { %v1505_v38 = vpop.f32.mrf.mxu1 }
 0x15a   :  { %1993 = vmatmul.mubr.bf16.gmra.mxu0 %v1685_v36  ;;  %v1506_v43 = vadd.f32 %v1505_v38, %v269_v57 }
 0x15b   :  { %v1509_v39 = vpop.f32.mrf.mxu1 }
 0x15c   :  { %v1510_v55 = vadd.f32 %v1509_v39, %v265_v58  ;;  %v2255_v58 = vld [vmem:[%s3549_s4] ss:$0 sm:$0xff] }
 0x15d   :  { %v1511_v40 = vpop.f32.mrf.mxu1 }
 0x15e   :  { %v1512_v1 = vadd.f32 %v1511_v40, %v269_v57 }
 0x15f   :  { %v1513_v41 = vpop.f32.mrf.mxu1 }
 0x161   :  { %v1514_v42 = vpop.f32.mrf.mxu1 }
 0x182   :  { %v1550_v44 = vpop.f32.mrf.mxu0 }
 0x183   :  { %v1551_v37 = vadd.f32 %v1550_v44, %v1500_v20 }
 0x184   :  { %v1552_v45 = vpop.f32.mrf.mxu0 }
 0x185   :  { %v1553_v53 = vadd.f32 %v1552_v45, %v1502_v14 }
 0x186   :  { %v1554_v47 = vpop.f32.mrf.mxu0 }
 0x187   :  { %v1555_v54 = vadd.f32 %v1554_v47, %v1504_v27 }
 0x188   :  { %v1556_v48 = vpop.f32.mrf.mxu0 }
 0x189   :  { %v1557_v5 = vadd.f32 %v1556_v48, %v1506_v43 }
 0x18a   :  { %v1560_v52 = vpop.f32.mrf.mxu0 }
 0x18b   :  { %v1561_v26 = vadd.f32 %v1560_v52, %v1510_v55 }
 0x18c   :  { %v1562_v56 = vpop.f32.mrf.mxu0 }
 0x18d   :  { %v1563_v46 = vadd.f32 %v1562_v56, %v1512_v1 }
 0x18e   :  { %v1564_v59 = vpop.f32.mrf.mxu0 }
 0x190   :  { %v1565_v60 = vpop.f32.mrf.mxu0 }
 0x192   :  { %v1652_v62 = vpop.f32.mrf.mxu0 }
 0x193   :  { %v1601_v61 = vpop.f32.mrf.mxu1 }
 0x194   :  { %v1654_v35 = vpop.f32.mrf.mxu0  ;;  %v1602_v50 = vadd.f32 %v1601_v61, %v1551_v37 }
 0x195   :  { %v1603_v31 = vpop.f32.mrf.mxu1 }
 0x196   :  { %v1604_v4 = vadd.f32 %v1603_v31, %v1553_v53  ;;  %v1656_v0 = vpop.f32.mrf.mxu0  ;;  %v1653_v10 = vadd.f32 %v1652_v62, %v1602_v50 }
 0x197   :  { %v1605_v63 = vpop.f32.mrf.mxu1 }
 0x198   :  { %v1606_v13 = vadd.f32 %v1605_v63, %v1555_v54  ;;  %v1658_v3 = vpop.f32.mrf.mxu0  ;;  %v1655_v19 = vadd.f32 %v1654_v35, %v1604_v4  ;;  %v1671_v8 = vmax.f32 %v1653_v10, 0.0 }
 0x199   :  { %v1607_v2 = vpop.f32.mrf.mxu1 }
 0x19a   :  { %v1657_v6 = vadd.f32 %v1656_v0, %v1606_v13  ;;  %v1608_v9 = vadd.f32 %v1607_v2, %v1557_v5  ;;  %v1662_v11 = vpop.f32.mrf.mxu0  ;;  %v1672_v21 = vmax.f32 %v1655_v19, 0.0 }
 0x19b   :  { %v1611_v7 = vpop.f32.mrf.mxu1 }
 0x19c   :  { %v1659_v12 = vadd.f32 %v1658_v3, %v1608_v9  ;;  %v1675_v15 = vmax.f32 %v1657_v6, 0.0  ;;  %v1612_v16 = vadd.f32 %v1611_v7, %v1561_v26  ;;  %v1664_v18 = vpop.f32.mrf.mxu0 }
 0x19d   :  { %v1613_v17 = vpop.f32.mrf.mxu1 }
 0x19e   :  { %v1676_v22 = vmax.f32 %v1659_v12, 0.0  ;;  %v1614_v23 = vadd.f32 %v1613_v17, %v1563_v46  ;;  %v1666_v25 = vpop.f32.mrf.mxu0  ;;  %v1683_v30 = vpack.c.bf16 %v1675_v15, %v1671_v8  ;;  %v1663_v32 = vadd.f32 %v1662_v11, %v1612_v16 }
 0x19f   :  { %v1615_v24 = vpop.f32.mrf.mxu1 }
 0x1a0   :  { %v1684_v28 = vpack.c.bf16 %v1676_v22, %v1672_v21  ;;  %v1665_v29 = vadd.f32 %v1664_v18, %v1614_v23  ;;  %v1667_v34 = vpop.f32.mrf.mxu0  ;;  %v1679_v39 = vmax.f32 %v1663_v32, 0.0 }
 0x1a1   :  { %v1616_v33 = vpop.f32.mrf.mxu1 }
 0x1a2   :  { %v1680_v36 = vmax.f32 %v1665_v29, 0.0  ;;  %2032 = vmatprep.mubr.bf16.mxu1 %v1684_v28  ;;  %v1687_v40 = vpack.c.bf16 %v1679_v39, %v1679_v39 }
 0x1a3   :  { %2033 = vmatmul.mubr.bf16.vlgmr.msra.gmra.mxu1 %v1683_v30 }
 0x1a4   :  { %v1688_v38 = vpack.c.bf16 %v1680_v36, %v1680_v36 }
 0x1a6   :  { %2040 = vmatprep.mubr.bf16.mxu1 %v1688_v38 }
 0x1ab   :  { %2041 = vmatmul.mubr.bf16.gmra.mxu1 %v1687_v40 }
 0x212   :  { %v2304_v41 = vpop.f32.mrf.mxu0 }
 0x214   :  { %v2305_v42 = vpop.f32.mrf.mxu0 }
 0x215   :  { %v2306_v44 = vadd.f32 %v2305_v42, %v2304_v41 }
 0x216   :  { %v2307_v45 = vpop.f32.mrf.mxu0 }
 0x217   :  { %v1987_v14 = vadd.f32 %v2306_v44, %v2255_v58 }
 0x218   :  { %v2308_v47 = vpop.f32.mrf.mxu0 }
 0x219   :  { %v2309_v48 = vadd.f32 %v2308_v47, %v2307_v45 }
 0x21a   :  { %v2310_v49 = vpop.f32.mrf.mxu0 }
 0x21b   :  { %v1990_v53 = vadd.f32 %v2309_v48, %v2255_v58 }
 0x21c   :  { %v2311_v51 = vpop.f32.mrf.mxu0 }
 0x21d   :  { %v2312_v52 = vadd.f32 %v2311_v51, %v2310_v49 }
 0x21e   :  { %v2313_v56 = vpop.f32.mrf.mxu0 }
 0x21f   :  { %v1995_v54 = vadd.f32 %v2312_v52, %v2255_v58 }
 0x220   :  { %v2314_v57 = vpop.f32.mrf.mxu0 }
 0x263   :  { %v2332_v59 = vpop.f32.mrf.mxu1 }
 0x265   :  { %v2333_v60 = vpop.f32.mrf.mxu1 }
 0x266   :  { %v2334_v20 = vadd.f32 %v2333_v60, %v2332_v59 }
 0x267   :  { %v2335_v61 = vpop.f32.mrf.mxu1 }
 0x268   :  { %v2035_v62 = vadd.f32 %v2334_v20, %v1987_v14 }
 0x269   :  { %v2336_v27 = vpop.f32.mrf.mxu1 }
 0x26a   :  { %2048 = vst [vmem:[%s3550_s5] sm:$0xff] %v2035_v62  ;;  %v2337_v37 = vadd.f32 %v2336_v27, %v2335_v61 }
 0x26b   :  { %v2338_v31 = vpop.f32.mrf.mxu1 }
 0x26c   :  { %v2038_v35 = vadd.f32 %v2337_v37, %v1990_v53 }
 0x26d   :  { %v2339_v43 = vpop.f32.mrf.mxu1 }
 0x26e   :  { %2049 = vst [vmem:[%s3550_s5 + $0x8] sm:$0xff] %v2038_v35  ;;  %v2340_v4 = vadd.f32 %v2339_v43, %v2338_v31 }
 0x26f   :  { %v2341_v55 = vpop.f32.mrf.mxu1 }
 0x270   :  { %v2043_v50 = vadd.f32 %v2340_v4, %v1995_v54 }
 0x271   :  { %v2342_v63 = vpop.f32.mrf.mxu1 }
 0x272   :  { %2050 = vst [vmem:[%s3550_s5 + $0x10] sm:$0xff] %v2043_v50 }

</bundles_post_ra>
